<compile_context>
chip_gen: v7x
topology: tpu7x:2x2x1
jax: 0.10.0
libtpu: 0.0.40
codegen_flags: <defaults>
</compile_context>

<pallas_src>
import math

import jax
import jax.numpy as jnp
from jax.experimental import pallas as pl
from jax.experimental.pallas import tpu as pltpu

LN_EPS = 1e-5                      # PyTorch nn.LayerNorm default
INV_SQRT2 = 1.0 / math.sqrt(2.0)


def _erf_f32(x):
    # Abramowitz & Stegun 7.1.26 rational approximation (max abs err ~1.5e-7).
    # Built only from ops with guaranteed Mosaic lowerings (abs/mul/add/div/exp/select).
    a1, a2, a3, a4, a5 = 0.254829592, -0.284496736, 1.421413741, -1.453152027, 1.061405429
    p = 0.3275911
    ax = jnp.abs(x)
    t = 1.0 / (1.0 + p * ax)
    poly = ((((a5 * t + a4) * t + a3) * t + a2) * t + a1) * t
    y = 1.0 - poly * jnp.exp(-ax * ax)
    return jnp.where(x < 0.0, -y, y)


def _feedforward_kernel(x_ref, g_ref, b_ref, w1_ref, b1_ref, w2_ref, b2_ref,
                        o_ref):
    # ---- LayerNorm (pre_norm) ----
    x = x_ref[0]                                          # (n, d)
    mean = jnp.mean(x, axis=-1, keepdims=True)
    cx = x - mean
    var = jnp.mean(cx * cx, axis=-1, keepdims=True)
    xn = cx * jax.lax.rsqrt(var + LN_EPS) * g_ref[0] + b_ref[0]

    # ---- fc_1 (weights pre-transposed in wrapper: (d, ff)) ----
    h = jnp.dot(xn, w1_ref[...], preferred_element_type=jnp.float32) + b1_ref[0]

    # ---- exact (erf-based) GeLU ----
    # torch.erf has no direct Mosaic primitive; use an f32-accurate approximation.
    h = h * 0.5 * (1.0 + _erf_f32(h * INV_SQRT2))

    # ---- fc_2 (weights pre-transposed in wrapper: (ff, d)) + residual ----
    y = jnp.dot(h, w2_ref[...], preferred_element_type=jnp.float32) + b2_ref[0]
    o_ref[0] = (y + xn).astype(o_ref.dtype)


def feedforward_pallas(x, gamma, beta, w1, b1, w2, b2):
    """x: (bs, n, d); w1: (ff, d); b1: (ff,); w2: (d, ff); b2: (d,)."""
    bs, n, d = x.shape
    ff = w1.shape[0]

    # Layout plumbing in the wrapper (free): transpose once, reshape biases to 2-D.
    w1t = jnp.asarray(w1).T                # (d, ff)
    w2t = jnp.asarray(w2).T                # (ff, d)
    gamma2 = gamma.reshape(1, d)
    beta2 = beta.reshape(1, d)
    b1_2 = b1.reshape(1, ff)
    b2_2 = b2.reshape(1, d)

    return pl.pallas_call(
        _feedforward_kernel,
        out_shape=jax.ShapeDtypeStruct((bs, n, d), x.dtype),
        grid_spec=pltpu.PrefetchScalarGridSpec(
            num_scalar_prefetch=0,
            grid=(bs,),
            in_specs=[
                pl.BlockSpec((1, n, d), lambda b: (b, 0, 0)),   # x (one batch)
                pl.BlockSpec((1, d), lambda b: (0, 0)),         # ln gamma (resident)
                pl.BlockSpec((1, d), lambda b: (0, 0)),         # ln beta  (resident)
                pl.BlockSpec((d, ff), lambda b: (0, 0)),        # fc1 W^T  (resident)
                pl.BlockSpec((1, ff), lambda b: (0, 0)),        # fc1 bias (resident)
                pl.BlockSpec((ff, d), lambda b: (0, 0)),        # fc2 W^T  (resident)
                pl.BlockSpec((1, d), lambda b: (0, 0)),         # fc2 bias (resident)
            ],
            out_specs=pl.BlockSpec((1, n, d), lambda b: (b, 0, 0)),
        ),
        compiler_params=pltpu.CompilerParams(
            dimension_semantics=("parallel",)),
    )(x, gamma2, beta2, w1t, b1_2, w2t, b2_2)


def feedforward_ref(x, gamma, beta, w1, b1, w2, b2):
    """Pure-JAX reference mirroring the PyTorch forward (pre_norm=True)."""
    mean = x.mean(-1, keepdims=True)
    var = ((x - mean) ** 2).mean(-1, keepdims=True)
    xn = (x - mean) / jnp.sqrt(var + LN_EPS) * gamma + beta
    h = xn @ w1.T + b1
    h = h * 0.5 * (1.0 + jax.scipy.special.erf(h / math.sqrt(2.0)))
    return h @ w2.T + b2 + xn


if __name__ == "__main__":
    # config: model_dim=32, ff_dim=128 (4x), pre_norm=True; batch=2, seq=8
    bs, n, d, ff = 2, 8, 32, 128

    key = jax.random.PRNGKey(0)
    ks = jax.random.split(key, 6)
    x = jax.random.normal(ks[0], (bs, n, d), dtype=jnp.float32)

    # deterministic parameter init (Linear-style uniform scaling)
    w1 = jax.random.uniform(ks[1], (ff, d), jnp.float32, -1, 1) / math.sqrt(d)
    b1 = jax.random.uniform(ks[2], (ff,), jnp.float32, -1, 1) / math.sqrt(d)
    w2 = jax.random.uniform(ks[3], (d, ff), jnp.float32, -1, 1) / math.sqrt(ff)
    b2 = jax.random.uniform(ks[4], (d,), jnp.float32, -1, 1) / math.sqrt(ff)
    gamma = jnp.ones((d,), jnp.float32)
    beta = jnp.zeros((d,), jnp.float32)

    out = feedforward_pallas(x, gamma, beta, w1, b1, w2, b2)
    jax.block_until_ready(out)

    out_r = feedforward_ref(x, gamma, beta, w1, b1, w2, b2)
    assert jnp.allclose(out, out_r, atol=1e-4, rtol=1e-4), "out mismatch"

    print("KERNEL_OK")
</pallas_src>

<mosaic_0001>
module attributes {stable_mosaic.version = 11 : i64} {
  func.func @_feedforward_kernel(%arg0: i32, %arg1: memref<1x8x32xf32, #tpu.memory_space<vmem>>, %arg2: memref<1x32xf32, #tpu.memory_space<vmem>>, %arg3: memref<1x32xf32, #tpu.memory_space<vmem>>, %arg4: memref<32x128xf32, #tpu.memory_space<vmem>>, %arg5: memref<1x128xf32, #tpu.memory_space<vmem>>, %arg6: memref<128x32xf32, #tpu.memory_space<vmem>>, %arg7: memref<1x32xf32, #tpu.memory_space<vmem>>, %arg8: memref<1x8x32xf32, #tpu.memory_space<vmem>>) attributes {dimension_semantics = [#tpu.dimension_semantics<parallel>], iteration_bounds = array<i64: 2>, scalar_prefetch = 0 : i64, scratch_operands = 0 : i64, tpu.core_type = #tpu.core_type<tc>, window_params = [{transform_indices = @transform_0, window_bounds = array<i64: 1, 8, 32>}, {pipeline_mode = #tpu.pipeline_mode<synchronous>, transform_indices = @transform_1, window_bounds = array<i64: 1, 32>}, {pipeline_mode = #tpu.pipeline_mode<synchronous>, transform_indices = @transform_2, window_bounds = array<i64: 1, 32>}, {pipeline_mode = #tpu.pipeline_mode<synchronous>, transform_indices = @transform_3, window_bounds = array<i64: 32, 128>}, {pipeline_mode = #tpu.pipeline_mode<synchronous>, transform_indices = @transform_4, window_bounds = array<i64: 1, 128>}, {pipeline_mode = #tpu.pipeline_mode<synchronous>, transform_indices = @transform_5, window_bounds = array<i64: 128, 32>}, {pipeline_mode = #tpu.pipeline_mode<synchronous>, transform_indices = @transform_6, window_bounds = array<i64: 1, 32>}, {transform_indices = @transform_7, window_bounds = array<i64: 1, 8, 32>}]} {
    %c0 = arith.constant 0 : index
    %c0_0 = arith.constant 0 : index
    %c0_1 = arith.constant 0 : index
    %0 = vector.load %arg1[%c0, %c0_0, %c0_1] : memref<1x8x32xf32, #tpu.memory_space<vmem>>, vector<1x8x32xf32>
    %1 = vector.shape_cast %0 : vector<1x8x32xf32> to vector<8x32xf32>
    %cst = arith.constant dense<0.000000e+00> : vector<8xf32>
    %2 = vector.multi_reduction <add>, %1, %cst [1] : vector<8x32xf32> to vector<8xf32>
    %3 = vector.shape_cast %2 : vector<8xf32> to vector<8x1xf32>
    %cst_2 = arith.constant 3.200000e+01 : f32
    %4 = vector.broadcast %cst_2 : f32 to vector<8x1xf32>
    %5 = arith.divf %3, %4 : vector<8x1xf32>
    %6 = vector.broadcast %5 : vector<8x1xf32> to vector<8x32xf32>
    %7 = arith.subf %1, %6 : vector<8x32xf32>
    %8 = arith.mulf %7, %7 : vector<8x32xf32>
    %cst_3 = arith.constant dense<0.000000e+00> : vector<8xf32>
    %9 = vector.multi_reduction <add>, %8, %cst_3 [1] : vector<8x32xf32> to vector<8xf32>
    %10 = vector.shape_cast %9 : vector<8xf32> to vector<8x1xf32>
    %cst_4 = arith.constant 3.200000e+01 : f32
    %11 = vector.broadcast %cst_4 : f32 to vector<8x1xf32>
    %12 = arith.divf %10, %11 : vector<8x1xf32>
    %cst_5 = arith.constant 9.99999974E-6 : f32
    %13 = vector.broadcast %cst_5 : f32 to vector<8x1xf32>
    %14 = arith.addf %12, %13 : vector<8x1xf32>
    %15 = math.rsqrt %14 : vector<8x1xf32>
    %16 = vector.broadcast %15 : vector<8x1xf32> to vector<8x32xf32>
    %17 = arith.mulf %7, %16 : vector<8x32xf32>
    %c0_6 = arith.constant 0 : index
    %c0_7 = arith.constant 0 : index
    %18 = vector.load %arg2[%c0_6, %c0_7] : memref<1x32xf32, #tpu.memory_space<vmem>>, vector<1x32xf32>
    %19 = vector.shape_cast %18 : vector<1x32xf32> to vector<32xf32>
    %20 = vector.shape_cast %19 : vector<32xf32> to vector<1x32xf32>
    %21 = vector.broadcast %20 : vector<1x32xf32> to vector<8x32xf32>
    %22 = arith.mulf %17, %21 : vector<8x32xf32>
    %c0_8 = arith.constant 0 : index
    %c0_9 = arith.constant 0 : index
    %23 = vector.load %arg3[%c0_8, %c0_9] : memref<1x32xf32, #tpu.memory_space<vmem>>, vector<1x32xf32>
    %24 = vector.shape_cast %23 : vector<1x32xf32> to vector<32xf32>
    %25 = vector.shape_cast %24 : vector<32xf32> to vector<1x32xf32>
    %26 = vector.broadcast %25 : vector<1x32xf32> to vector<8x32xf32>
    %27 = arith.addf %22, %26 : vector<8x32xf32>
    %c0_10 = arith.constant 0 : index
    %c0_11 = arith.constant 0 : index
    %28 = vector.load %arg4[%c0_10, %c0_11] : memref<32x128xf32, #tpu.memory_space<vmem>>, vector<32x128xf32>
    %cst_12 = arith.constant dense<0.000000e+00> : vector<8x128xf32>
    %29 = tpu.matmul %27, %28, %cst_12 {dimension_numbers = #tpu.dot_dimension_numbers<[1], [0], [0], [1], [0, 0, 1, 1], [], []>} : vector<8x32xf32>, vector<32x128xf32>, vector<8x128xf32> -> vector<8x128xf32>
    %c0_13 = arith.constant 0 : index
    %c0_14 = arith.constant 0 : index
    %30 = vector.load %arg5[%c0_13, %c0_14] : memref<1x128xf32, #tpu.memory_space<vmem>>, vector<1x128xf32>
    %31 = vector.shape_cast %30 : vector<1x128xf32> to vector<128xf32>
    %32 = vector.shape_cast %31 : vector<128xf32> to vector<1x128xf32>
    %33 = vector.broadcast %32 : vector<1x128xf32> to vector<8x128xf32>
    %34 = arith.addf %29, %33 : vector<8x128xf32>
    %cst_15 = arith.constant 5.000000e-01 : f32
    %35 = vector.broadcast %cst_15 : f32 to vector<8x128xf32>
    %36 = arith.mulf %34, %35 : vector<8x128xf32>
    %cst_16 = arith.constant 0.707106769 : f32
    %37 = vector.broadcast %cst_16 : f32 to vector<8x128xf32>
    %38 = arith.mulf %34, %37 : vector<8x128xf32>
    %39 = math.absf %38 : vector<8x128xf32>
    %cst_17 = arith.constant 0.327591091 : f32
    %40 = vector.broadcast %cst_17 : f32 to vector<8x128xf32>
    %41 = arith.mulf %40, %39 : vector<8x128xf32>
    %cst_18 = arith.constant 1.000000e+00 : f32
    %42 = vector.broadcast %cst_18 : f32 to vector<8x128xf32>
    %43 = arith.addf %42, %41 : vector<8x128xf32>
    %cst_19 = arith.constant 1.000000e+00 : f32
    %44 = vector.broadcast %cst_19 : f32 to vector<8x128xf32>
    %45 = arith.divf %44, %43 : vector<8x128xf32>
    %cst_20 = arith.constant 1.06140542 : f32
    %46 = vector.broadcast %cst_20 : f32 to vector<8x128xf32>
    %47 = arith.mulf %46, %45 : vector<8x128xf32>
    %cst_21 = arith.constant -1.45315206 : f32
    %48 = vector.broadcast %cst_21 : f32 to vector<8x128xf32>
    %49 = arith.addf %47, %48 : vector<8x128xf32>
    %50 = arith.mulf %49, %45 : vector<8x128xf32>
    %cst_22 = arith.constant 1.42141378 : f32
    %51 = vector.broadcast %cst_22 : f32 to vector<8x128xf32>
    %52 = arith.addf %50, %51 : vector<8x128xf32>
    %53 = arith.mulf %52, %45 : vector<8x128xf32>
    %cst_23 = arith.constant -0.284496725 : f32
    %54 = vector.broadcast %cst_23 : f32 to vector<8x128xf32>
    %55 = arith.addf %53, %54 : vector<8x128xf32>
    %56 = arith.mulf %55, %45 : vector<8x128xf32>
    %cst_24 = arith.constant 0.254829586 : f32
    %57 = vector.broadcast %cst_24 : f32 to vector<8x128xf32>
    %58 = arith.addf %56, %57 : vector<8x128xf32>
    %59 = arith.mulf %58, %45 : vector<8x128xf32>
    %cst_25 = arith.constant 0.000000e+00 : f32
    %60 = vector.broadcast %cst_25 : f32 to vector<8x128xf32>
    %61 = arith.subf %60, %39 : vector<8x128xf32>
    %62 = arith.mulf %61, %39 : vector<8x128xf32>
    %63 = math.exp %62 : vector<8x128xf32>
    %64 = arith.mulf %59, %63 : vector<8x128xf32>
    %cst_26 = arith.constant 1.000000e+00 : f32
    %65 = vector.broadcast %cst_26 : f32 to vector<8x128xf32>
    %66 = arith.subf %65, %64 : vector<8x128xf32>
    %cst_27 = arith.constant 0.000000e+00 : f32
    %67 = vector.broadcast %cst_27 : f32 to vector<8x128xf32>
    %68 = arith.cmpf olt, %38, %67 : vector<8x128xf32>
    %cst_28 = arith.constant 0.000000e+00 : f32
    %69 = vector.broadcast %cst_28 : f32 to vector<8x128xf32>
    %70 = arith.subf %69, %66 : vector<8x128xf32>
    %71 = arith.select %68, %70, %66 : vector<8x128xi1>, vector<8x128xf32>
    %cst_29 = arith.constant 1.000000e+00 : f32
    %72 = vector.broadcast %cst_29 : f32 to vector<8x128xf32>
    %73 = arith.addf %72, %71 : vector<8x128xf32>
    %74 = arith.mulf %36, %73 : vector<8x128xf32>
    %c0_30 = arith.constant 0 : index
    %c0_31 = arith.constant 0 : index
    %75 = vector.load %arg6[%c0_30, %c0_31] : memref<128x32xf32, #tpu.memory_space<vmem>>, vector<128x32xf32>
    %cst_32 = arith.constant dense<0.000000e+00> : vector<8x32xf32>
    %76 = tpu.matmul %74, %75, %cst_32 {dimension_numbers = #tpu.dot_dimension_numbers<[1], [0], [0], [1], [0, 0, 1, 1], [], []>} : vector<8x128xf32>, vector<128x32xf32>, vector<8x32xf32> -> vector<8x32xf32>
    %c0_33 = arith.constant 0 : index
    %c0_34 = arith.constant 0 : index
    %77 = vector.load %arg7[%c0_33, %c0_34] : memref<1x32xf32, #tpu.memory_space<vmem>>, vector<1x32xf32>
    %78 = vector.shape_cast %77 : vector<1x32xf32> to vector<32xf32>
    %79 = vector.shape_cast %78 : vector<32xf32> to vector<1x32xf32>
    %80 = vector.broadcast %79 : vector<1x32xf32> to vector<8x32xf32>
    %81 = arith.addf %76, %80 : vector<8x32xf32>
    %82 = arith.addf %81, %27 : vector<8x32xf32>
    %c0_35 = arith.constant 0 : index
    %c0_36 = arith.constant 0 : index
    %c0_37 = arith.constant 0 : index
    %83 = vector.load %arg8[%c0_35, %c0_36, %c0_37] : memref<1x8x32xf32, #tpu.memory_space<vmem>>, vector<1x8x32xf32>
    %84 = vector.shape_cast %83 : vector<1x8x32xf32> to vector<8x32xf32>
    %85 = vector.shape_cast %82 : vector<8x32xf32> to vector<1x8x32xf32>
    tpu.vector_store %arg8[%c0_35, %c0_36, %c0_37], %85 {strides = array<i32>} : memref<1x8x32xf32, #tpu.memory_space<vmem>>, vector<1x8x32xf32>,
    return
  }
  func.func @transform_0(%arg0: i32) -> (i32, i32, i32) {
    %c0_i32 = arith.constant 0 : i32
    %c0_i32_0 = arith.constant 0 : i32
    %c0_i32_1 = arith.constant 0 : i32
    return %arg0, %c0_i32, %c0_i32_0 : i32, i32, i32
  }
  func.func @transform_1(%arg0: i32) -> (i32, i32) {
    %c0_i32 = arith.constant 0 : i32
    %c0_i32_0 = arith.constant 0 : i32
    %c0_i32_1 = arith.constant 0 : i32
    return %c0_i32, %c0_i32_0 : i32, i32
  }
  func.func @transform_2(%arg0: i32) -> (i32, i32) {
    %c0_i32 = arith.constant 0 : i32
    %c0_i32_0 = arith.constant 0 : i32
    %c0_i32_1 = arith.constant 0 : i32
    return %c0_i32, %c0_i32_0 : i32, i32
  }
  func.func @transform_3(%arg0: i32) -> (i32, i32) {
    %c0_i32 = arith.constant 0 : i32
    %c0_i32_0 = arith.constant 0 : i32
    %c0_i32_1 = arith.constant 0 : i32
    return %c0_i32, %c0_i32_0 : i32, i32
  }
  func.func @transform_4(%arg0: i32) -> (i32, i32) {
    %c0_i32 = arith.constant 0 : i32
    %c0_i32_0 = arith.constant 0 : i32
    %c0_i32_1 = arith.constant 0 : i32
    return %c0_i32, %c0_i32_0 : i32, i32
  }
  func.func @transform_5(%arg0: i32) -> (i32, i32) {
    %c0_i32 = arith.constant 0 : i32
    %c0_i32_0 = arith.constant 0 : i32
    %c0_i32_1 = arith.constant 0 : i32
    return %c0_i32, %c0_i32_0 : i32, i32
  }
  func.func @transform_6(%arg0: i32) -> (i32, i32) {
    %c0_i32 = arith.constant 0 : i32
    %c0_i32_0 = arith.constant 0 : i32
    %c0_i32_1 = arith.constant 0 : i32
    return %c0_i32, %c0_i32_0 : i32, i32
  }
  func.func @transform_7(%arg0: i32) -> (i32, i32, i32) {
    %c0_i32 = arith.constant 0 : i32
    %c0_i32_0 = arith.constant 0 : i32
    %c0_i32_1 = arith.constant 0 : i32
    return %arg0, %c0_i32, %c0_i32_0 : i32, i32, i32
  }
}

</mosaic_0001>

<bundles_post_ra>
// kernel: tpu_custom_call.1
= control target key start
LH: loop header
LB: loop body
LE: loop exit
PB: predicated region body
PF: predicated region fallthrough
CT: control target
= control target key end

     0   :  { %12 = vsyncpa [#allocation3], 0  ;;  %s1034_s0 = inlined_call_operand.vmem [shape: f32[2,8,32], index: 0, kind: input, shape index: {}]   ;;  %s1035_s1 = inlined_call_operand.vmem [shape: f32[1,32], index: 1, kind: input, shape index: {}]   ;;  %s1036_s2 = inlined_call_operand.vmem [shape: f32[1,32], index: 2, kind: input, shape index: {}]   ;;  %s1037_s3 = inlined_call_operand.vmem [shape: f32[32,128], index: 3, kind: input, shape index: {}]   ;;  %s1038_s4 = inlined_call_operand.vmem [shape: f32[1,128], index: 4, kind: input, shape index: {}]   ;;  %s1039_s5 = inlined_call_operand.vmem [shape: f32[128,32], index: 5, kind: input, shape index: {}]   ;;  %s1040_s6 = inlined_call_operand.vmem [shape: f32[1,32], index: 6, kind: input, shape index: {}]   ;;  %s1041_s7 = inlined_call_operand.hbm [shape: f32[2,8,32], index: 7, kind: output, shape index: {}]  }
   0x1   :  { %14 = vsyncpa [#allocation3 + $0x1], 0  ;;  %s854_s24 = smov 0   ;;  %s856_s25 = smov 0  }
   0x2   :  { %s858_s26 = smov 0   ;;  %s860_s27 = smov 0  }
   0x3 LB: > { %s875_s28 = sadd.s32 4294967295, %s808_s27   ;;  %s585_s29 = sadd.s32 4294967294, %s808_s27   ;;  %s808_s27 = sphi %s860_s27, %s1047_s27   ;;  %s804_s26 = sphi %s858_s26, %s1046_s26   ;;  %s800_s25 = sphi %s856_s25, %s1045_s25   ;;  %s796_s24 = sphi %s854_s24, %s1044_s24  }
   0x4   : > { %s879_s30 = sadd.s32 1, %s808_s27   ;;  %s179_s8 = sadd.s32 1, %s804_s26 }
   0x5   : > { %s176_s9 = ssub.s32 %s808_s27, %s879_s30  ;;  %p189_p0 = scmp.ne.s32.totalorder %s804_s26, %s800_s25 }
   0x6   : > { %p177_p1 = scmp.eq.s32.totalorder %s176_s9, 0  ;;  %p190_p2 = scmp.eq.s32.totalorder %s875_s28, 1 }
   0x7   : > { %p195_p3 = scmp.ne.s32.totalorder %s800_s25, %s796_s24  ;;  %p196_p4 = scmp.eq.s32.totalorder %s585_s29, 1 }
   0x8   : > { %s890_s10 = scalar_select %p177_p1, %s804_s26, %s179_s8  }
   0x9   : > { %p892_p5 = por %p190_p2, %p189_p0  ;;  %p896_p6 = por %p196_p4, %p195_p3 }
   0xa   : > { %p588_p7 = scmp.ge.s32.totalorder %s808_s27, 1  ;;  %p239_p8 = scmp.lt.s32.totalorder %s808_s27, 3 }
   0xc   : > { %p240_p9 = pnand %p588_p7, %p239_p8 }
   0xd   : > { %p270_p10 = scmp.lt.s32.totalorder (!%p240_p9), %s875_s28, 1  ;;  %vm275_vm0 = vcmask (!%p240_p9), 261120   ;;  %v306_v7 = vld [vmem:[%s1037_s3] sm:$0xff] (!%p240_p9)  ;;  %v307_v8 = vld [vmem:[%s1037_s3 + $0x8] sm:$0xff] (!%p240_p9)  ;;  %v308_v9 = vld [vmem:[%s1037_s3 + $0x10] sm:$0xff] (!%p240_p9)  ;;  %v810_v10 = vmov (!%p240_p9), 0.0|0.0  }
   0xe   : > { %243 = sbr.rel (%p240_p9) target bundleno = 831 (0x33f), region = 48  ;;  %668 = vmatprep.subr.bf16.mxu0 (!%p240_p9), %v810_v10  ;;  %v669_v11 = vpack.c.bf16 (!%p240_p9), %v307_v8, %v306_v7  ;;  %v309_v12 = vld [vmem:[%s1037_s3 + $0x18] sm:$0xff] (!%p240_p9)  ;;  %vm811_vm1 = vmmov (!%p240_p9), 0   ;;  %v812_v13 = vmov (!%p240_p9), 0.0   ;;  %674 = vmatprep.subr.bf16.mxu1 (!%p240_p9), %v810_v10  ;;  %v591_v19 = vld [vmem:[%s1035_s1] ss:$0 sm:$0xff] (!%p240_p9) }
   0xf   : > { %630 = vmatprep.mubr.msk.f32.mxu0 (!%p240_p9), %vm811_vm1, %v812_v13  ;;  %665 = vmatprep.mubr.msk.f32.mxu1 (!%p240_p9), %vm811_vm1, %v812_v13  ;;  %v672_v14 = vpack.c.bf16 (!%p240_p9), %v309_v12, %v308_v9  ;;  %v592_v21 = vld [vmem:[%s1036_s2] ss:$0 sm:$0xff] (!%p240_p9)  ;;  %v418_v25 = vld [vmem:[%s1039_s5 + $0x8] sm:$0xff] (!%p240_p9)  ;;  %v419_v26 = vld [vmem:[%s1039_s5 + $0x10] sm:$0xff] (!%p240_p9)  ;;  %s267_s22 = sand.u32 (!%p240_p9), 1, %s800_s25   ;;  %s597_s9 = sshll.u32 (!%p240_p9), %s875_s28, 7 }
  0x10   : > { %670 = vmatpush3.bf16.msra.mxu0 (!%p240_p9), %v669_v11  ;;  %v417_v24 = vld [vmem:[%s1039_s5] sm:$0xff] (!%p240_p9)  ;;  %v420_v28 = vld [vmem:[%s1039_s5 + $0x18] sm:$0xff] (!%p240_p9)  ;;  %v422_v31 = vld [vmem:[%s1039_s5 + $0x28] sm:$0xff] (!%p240_p9)  ;;  %s589_s23 = sshll.u32 (!%p240_p9), %s267_s22, 3  ;;  %s513_s18 = scalar_lea.sflag (!%p240_p9), [#allocation3], %s267_s22 }
  0x11   : > { %671 = vmatprep.subr.bf16.mxu0 (!%p240_p9), %v810_v10  ;;  %v675_v27 = vpack.c.bf16 (!%p240_p9), %v418_v25, %v417_v24  ;;  %v678_v29 = vpack.c.bf16 (!%p240_p9), %v420_v28, %v419_v26  ;;  %v421_v30 = vld [vmem:[%s1039_s5 + $0x20] sm:$0xff] (!%p240_p9)  ;;  %v423_v33 = vld [vmem:[%s1039_s5 + $0x30] sm:$0xff] (!%p240_p9)  ;;  %v424_v34 = vld [vmem:[%s1039_s5 + $0x38] sm:$0xff] (!%p240_p9)  ;;  %s813_s19 = smov (!%p240_p9), [#allocation2]  }
  0x12   : > { %v681_v32 = vpack.c.bf16 (!%p240_p9), %v422_v31, %v421_v30  ;;  %v684_v35 = vpack.c.bf16 (!%p240_p9), %v424_v34, %v423_v33  ;;  %v425_v36 = vld [vmem:[%s1039_s5 + $0x40] sm:$0xff] (!%p240_p9)  ;;  %v426_v37 = vld [vmem:[%s1039_s5 + $0x48] sm:$0xff] (!%p240_p9)  ;;  %v427_v39 = vld [vmem:[%s1039_s5 + $0x50] sm:$0xff] (!%p240_p9)  ;;  %s750_s20 = sshll.u32 (!%p240_p9), %s813_s19, 4  ;;  %s751_s20 = int_to_ptr.vmem [resolvable:$false] %s750_s20 }
  0x13   : > { %676 = vmatpush3.bf16.msra.mxu1 (!%p240_p9), %v675_v27  ;;  %v687_v38 = vpack.c.bf16 (!%p240_p9), %v426_v37, %v425_v36  ;;  %v428_v40 = vld [vmem:[%s1039_s5 + $0x58] sm:$0xff] (!%p240_p9)  ;;  %v429_v42 = vld [vmem:[%s1039_s5 + $0x60] sm:$0xff] (!%p240_p9)  ;;  %v430_v43 = vld [vmem:[%s1039_s5 + $0x68] sm:$0xff] (!%p240_p9)  ;;  %s752_s21 = scalar_lea.vmem (!%p240_p9), %s751_s20, 256 }
  0x14   : > { %673 = vmatpush3.bf16.msra.mxu0 (!%p240_p9), %v672_v14  ;;  %677 = vmatprep.subr.bf16.mxu1 (!%p240_p9), %v810_v10  ;;  %v690_v41 = vpack.c.bf16 (!%p240_p9), %v428_v40, %v427_v39  ;;  %v693_v44 = vpack.c.bf16 (!%p240_p9), %v430_v43, %v429_v42  ;;  %v431_v45 = vld [vmem:[%s1039_s5 + $0x70] sm:$0xff] (!%p240_p9)  ;;  %v432_v46 = vld [vmem:[%s1039_s5 + $0x78] sm:$0xff] (!%p240_p9)  ;;  %v593_v48 = vld [vmem:[%s1038_s4] ss:$0 sm:$0xff] (!%p240_p9) }
  0x15   : > { %s271_s13 = scalar_select %p270_p10, %s875_s28, 1  ;;  %v696_v47 = vpack.c.bf16 %v432_v46, %v431_v45  ;;  %v595_v13 = vld [vmem:[%s1040_s6] ss:$0 sm:$0xff] }
  0x17   : > { %s590_s14 = sshll.u32 %s271_s13, 3  ;;  %679 = vmatpush3.bf16.msra.mxu1 %v678_v29  ;;  %s269_s13 = scalar_lea.vmem [#allocation2], %s589_s23 }
  0x18   : > { %s273_s17 = scalar_lea.vmem %s1034_s0, %s590_s14  ;;  %680 = vmatprep.subr.bf16.mxu1 %v810_v10  ;;  %s526_s14 = sshll.u32 %s269_s13, 4  ;;  %s993_s14 = int_to_ptr.vmem [resolvable:$true] %s526_s14 }
  0x19   : > { %v274_v0 = vld [vmem:[%s273_s17] sm:$0xff]  ;;  %s991_s17 = scalar_lea.hbm %s1041_s7, %s597_s9  ;;  %s746_s28 = scalar_lea.vmem %s993_s14, 128 }
  0x1a   : > { %v276_v1 = vsel %vm275_vm0, %v274_v0, 0.0  ;;  %p747_p11 = scmp.ne.s32.totalorder %s993_s14, %s746_s28  ;;  %p753_p0 = scmp.lt.s32.totalorder %s993_s14, %s751_s20 }
  0x1b   : > { %277 = vadd.xlane.f32.xlu0 %v276_v1  ;;  %682 = vmatpush3.bf16.msra.mxu1 %v681_v32  ;;  %p754_p1 = scmp.lt.s32.totalorder %s752_s21, %s746_s28 }
  0x1c   : > { %683 = vmatprep.subr.bf16.mxu1 %v810_v10  ;;  %p748_p12 = pnand %p747_p11, %p892_p5 }
  0x1d   : > { %p755_p2 = por %p754_p1, %p753_p0 }
  0x1e   : > { %p749_p13 = pneg %p748_p12 }
  0x1f   : > { %685 = vmatpush3.bf16.msra.mxu1 %v684_v35 }
  0x20   : > { %686 = vmatprep.subr.bf16.mxu1 %v810_v10  ;;  %p756_p3 = pnand %p755_p2, %p749_p13 }
  0x23   : > { %688 = vmatpush3.bf16.msra.mxu1 %v687_v38 }
  0x24   : > { %689 = vmatprep.subr.bf16.mxu1 %v810_v10 }
  0x27   : > { %691 = vmatpush3.bf16.msra.mxu1 %v690_v41 }
  0x28   : > { %692 = vmatprep.subr.bf16.mxu1 %v810_v10 }
  0x2b   : > { %694 = vmatpush3.bf16.msra.mxu1 %v693_v44 }
  0x2c   : > { %695 = vmatprep.subr.bf16.mxu1 %v810_v10 }
  0x2f   : > { %697 = vmatpush3.bf16.msra.mxu1 %v696_v47 }
  0xa8   : > { %v278_v2 = vpop.xlane.xlu0 %277 }
  0xa9   : > { %v280_v3 = vmul.f32 0.03125, %v278_v2 }
  0xab   : > { %v281_v4 = vsub.f32 %v274_v0, %v280_v3 }
  0xad   : > { %v282_v5 = vmul.f32 %v281_v4, %v281_v4 }
  0xaf   : > { %v283_v6 = vsel %vm275_vm0, %v282_v5, 0.0 }
  0xb0   : > { %284 = vadd.xlane.f32.xlu0 %v283_v6 }
 0x13d   : > { %v285_v15 = vpop.xlane.xlu0 %284 }
 0x13e   : > { %v286_v16 = vmul.f32 0.03125, %v285_v15 }
 0x140   : > { %v287_v17 = vadd.f32 1e-05, %v286_v16 }
 0x142   : > { %740 = vrsqrt.f32 %v287_v17 }
 0x14c   : > { %v741_v18 = vpop.eup %740 }
 0x14d   : > { %v289_v20 = vmul.f32 %v741_v18, %v281_v4 }
 0x14f   : > { %v297_v22 = vmul.f32 %v591_v19, %v289_v20 }
 0x151   : > { %v927_v23 = vadd.f32 %v592_v21, %v297_v22 }
 0x153   : > { %631 = vmatmul.mubr.msk.f32.vlgmr.msra.gmra.mrb[0].mxu0 %vm275_vm0, %v927_v23 }
 0x226   : > { %v386_v49 = vpop.f32.mrb[0].mxu0 }
 0x227   : > { %v387_v50 = vadd.f32 %v593_v48, %v386_v49  ;;  %v632_v51 = vpop.f32.mrb[1].mxu0 }
 0x229   : > { %v391_v52 = vmul.f32 0.70710677, %v387_v50  ;;  %v390_v10 = vmul.f32 0.5, %v387_v50 }
 0x22b   : > { %v392_v53 = vand.u32 2147483647, %v391_v52  ;;  %vm412_vm2 = vcmp.lt.f32.partialorder %v391_v52, 0.0 }
 0x22d   : > { %v393_v54 = vmul.f32 0.3275911, %v392_v53  ;;  %v406_v56 = vsub.f32 0.0, %v392_v53 }
 0x22f   : > { %v394_v55 = vadd.f32 1.0, %v393_v54  ;;  %v407_v58 = vmul.f32 %v406_v56, %v392_v53 }
 0x231   : > { %742 = vrcp.f32 %v394_v55  ;;  %v408_v61 = vmul.f32 1.442695, %v407_v58 }
 0x233   : > { %744 = vpow2.f32 %v408_v61 }
 0x23b   : > { %v743_v57 = vpop.eup %742 }
 0x23c   : > { %v397_v59 = vmul.f32 1.0614054, %v743_v57 }
 0x23d   : > { %v745_v5 = vpop.eup %744 }
 0x23e   : > { %v398_v60 = vadd.f32 -1.4531521, %v397_v59 }
 0x240   : > { %v399_v62 = vmul.f32 %v743_v57, %v398_v60 }
 0x242   : > { %v400_v63 = vadd.f32 1.4214138, %v399_v62 }
 0x244   : > { %v401_v0 = vmul.f32 %v743_v57, %v400_v63 }
 0x246   : > { %v402_v1 = vadd.f32 -0.28449672, %v401_v0 }
 0x248   : > { %v403_v2 = vmul.f32 %v743_v57, %v402_v1 }
 0x24a   : > { %v404_v3 = vadd.f32 0.2548296, %v403_v2 }
 0x24c   : > { %v405_v4 = vmul.f32 %v743_v57, %v404_v3 }
 0x24e   : > { %v410_v6 = vmul.f32 %v745_v5, %v405_v4 }
 0x250   : > { %v411_v7 = vsub.f32 1.0, %v410_v6 }
 0x252   : > { %v413_v8 = vsub.f32 0.0, %v411_v7 }
 0x254   : > { %v414_v9 = vsel %vm412_vm2, %v413_v8, %v411_v7 }
 0x255   : > { %v415_v11 = vadd.f32 1.0, %v414_v9 }
 0x257   : > { %v416_v12 = vmul.f32 %v415_v11, %v390_v10 }
 0x259   : > { %666 = vmatmul.mubr.f32.vlgmr.msra.gmra.mrb[0].mxu1 %v416_v12 }
 0x32c   : > { %v506_v14 = vpop.f32.mrb[0].mxu1 }
 0x32d   : > { %v507_v15 = vadd.f32 %v595_v13, %v506_v14  ;;  %v667_v16 = vpop.f32.mrb[1].mxu1 }
 0x32f   : > { %v510_v17 = vadd.f32 %v507_v15, %v927_v23 }
 0x331   : > { %511 = vst.msk [vmem:[%s269_s13] sm:$0xff] %vm275_vm0, %v510_v17 }
 0x332   : > { %759 = shalt.err (!%p756_p3)
}
 0x333   : > { %s760_s22 = scalar_lea.hbm %s991_s17, 128  ;;  %s764_s8 = scalar_lea.hbm %s1041_s7, 256 }
 0x334   : > { %p761_p4 = scmp.ne.s32.totalorder %s991_s17, %s760_s22  ;;  %p765_p9 = scmp.lt.u32.totalorder %s991_s17, %s1041_s7 }
 0x335   : > { %p766_p10 = scmp.lt.u32.totalorder %s764_s8, %s760_s22  ;;  %p768_p12 = scmp.lt.u32.totalorder %s760_s22, %s991_s17 }
 0x336   : > { %p762_p7 = pnand %p761_p4, %p892_p5 }
 0x337   : > { %p767_p11 = por %p766_p10, %p765_p9 }
 0x338   : > { %p763_p8 = pneg %p762_p7 }
 0x339   : > { %p769_p13 = por %p768_p12, %p767_p11 }
 0x33b   : > { %p770_p0 = pnand %p769_p13, %p763_p8 }
 0x33d   : > { %773 = shalt.err (!%p770_p0)
}
 0x33e   : > { %698 = dma.vmem_to_hbm [thread:$0]  (%p892_p5), %s993_s14, 128, %s991_s17, %s513_s18  }
 0x33f PF: > { %p704_p1 = scmp.ge.s32.totalorder %s808_s27, 2  ;;  %s538_s15 = sand.u32 1, %s796_s24  }
 0x340   : > { %s539_s16 = scalar_lea.sflag [#allocation3], %s538_s15 }
 0x341   : > { %p701_p2 = pnand %p704_p1, %p896_p6 }
 0x343   : > { %791 = dma.done.wait (!%p701_p2), %s539_s16, 128  }
 0x344   : > { %793 = vsyncadd (!%p701_p2), %s539_s16, 4294967168  ;;  %p17_p3 = scmp.ge.s32.totalorder %s879_s30, 4   ;;  %s1044_s24 = smov %s800_s25 }
 0x345   : > { %s1045_s25 = smov %s804_s26  ;;  %s1046_s26 = smov %s890_s10 }
 0x346   : > { %s1047_s27 = smov %s879_s30  ;;  %19 = sbr.rel (!%p17_p3) target bundleno = 3 (0x3), region = 83 }
 0x34d   :  { %544 = vsyncpa [#allocation3], 1 }
 0x34e   :  { %546 = vsyncpa [#allocation3 + $0x1], 1 }

</bundles_post_ra>
